<compile_context>
chip_gen: v5e
topology: v5e:2x2
jax: 0.10.0
libtpu: 0.0.40
codegen_flags: <defaults>
</compile_context>

<pallas_src>
import functools

import jax
import jax.numpy as jnp
from jax.experimental import pallas as pl
from jax.experimental.pallas import tpu as pltpu


def _round_up(x, m):
    return (x + m - 1) // m * m


def weakgnn_kernel(x_ref, wf_ref, slab_ref, wl_ref, bl_ref, o_ref, *, hidden):
    # --- fused node_encoder @ conv: Linear(in_ch -> hid_pad), bf16 MXU, f32 acc.
    #     Padded columns of wf / row 0 of slab are exactly 0 -> h padded lanes == 0.
    x = x_ref[...].astype(jnp.bfloat16)
    h = jnp.dot(x, wf_ref[...], preferred_element_type=jnp.float32)
    slab = slab_ref[...]                      # (8, hid_pad) f32
    h = h + slab[0:1, :]                      # fused bias

    # --- layers[1:] are AdaGNNLayer with fixed=True -> identity (nothing to do)

    # --- LayerNorm over the ORIGINAL hidden width (unmasked; padded lanes of h
    #     are exactly 0, so plain sums equal the true sums). ---
    inv_h = 1.0 / float(hidden)
    mean = jnp.sum(h, axis=-1, keepdims=True) * inv_h
    ex2 = jnp.sum(h * h, axis=-1, keepdims=True) * inv_h
    var = jnp.maximum(ex2 - mean * mean, 0.0)
    hn = (h - mean) * jax.lax.rsqrt(var + 1e-5)
    hn = hn * slab[1:2, :] + slab[2:3, :]     # gamma/beta; padded lanes -> 0

    # --- ReLU ---
    hn = jnp.maximum(hn, 0.0)

    # --- final lin: Linear(hid_pad -> out_ch); padded rows of wl are 0. ---
    y = jnp.dot(hn.astype(jnp.bfloat16), wl_ref[...],
                preferred_element_type=jnp.float32) + bl_ref[...]
    o_ref[...] = y.astype(o_ref.dtype)


def weakgnn_prepare(params):
    """One-time parameter prep (hoisted out of the per-call forward):
    fuse node_encoder with layers[0].conv, zero-pad the hidden dim to a lane
    multiple, pack per-channel params into one slab, cast matmul weights to bf16.
    INVARIANT (load-bearing for the unmasked LayerNorm): all padded lanes of
    wf / slab / wl are exactly zero."""
    in_ch, hidden = params["w_node"].shape
    out_ch = params["w_lin"].shape[1]
    hid_pad = _round_up(hidden, 128)

    # Exact algebraic fusion: no nonlinearity between node_encoder and conv.
    w_fused = params["w_node"] @ params["w_conv"]                       # [in_ch, hidden]
    b_fused = params["b_node"] @ params["w_conv"] + params["b_conv"]    # [1, hidden]

    wf = (jnp.zeros((in_ch, hid_pad), jnp.float32)
          .at[:, :hidden].set(w_fused)).astype(jnp.bfloat16)
    wl = (jnp.zeros((hid_pad, out_ch), jnp.float32)
          .at[:hidden, :].set(params["w_lin"])).astype(jnp.bfloat16)
    slab = (jnp.zeros((8, hid_pad), jnp.float32)
            .at[0, :hidden].set(b_fused[0])
            .at[1, :hidden].set(params["ln_gamma"][0])
            .at[2, :hidden].set(params["ln_beta"][0]))
    bl = params["b_lin"].astype(jnp.float32)                            # [1, out_ch]

    return {"wf": wf, "slab": slab, "wl": wl, "bl": bl,
            "in_ch": in_ch, "hidden": hidden, "hid_pad": hid_pad, "out_ch": out_ch}


def _vmem_estimate(tile_n, in_ch, hid_pad, out_ch, x_bytes):
    """Rough per-step VMEM budget: double-buffered x/out tiles, double-buffered
    (tiny, loop-invariant) weights, plus f32 intermediates headroom."""
    weights = in_ch * hid_pad * 2 + 8 * hid_pad * 4 + hid_pad * out_ch * 2 + out_ch * 4
    return (2 * tile_n * in_ch * x_bytes
            + 2 * tile_n * out_ch * 4
            + 2 * weights
            + 6 * tile_n * hid_pad * 4)


def weakgnn_forward(x, edge_index, prep, *, max_tile_n=1024):
    """x: [N, in_ch] (f32 or bf16). edge_index unused (MLP path). Returns [N, out_ch] f32.
    `prep` comes from weakgnn_prepare() (one-time)."""
    del edge_index  # not used for gnn_type='MLP'
    N, in_ch = x.shape
    assert in_ch == prep["in_ch"]
    hidden, hid_pad, out_ch = prep["hidden"], prep["hid_pad"], prep["out_ch"]

    # Row tile: big enough to amortize the ~0.35us per-grid-step overhead, but
    # small enough that the grid has ~8 steps so "parallel" sharding keeps both
    # v7x TensorCores busy.  Shrink if the VMEM estimate exceeds a budget that
    # is safe on v5e/v6e/v7x.
    tile_n = max(8, min(max_tile_n, _round_up(pl.cdiv(N, 8), 8)))
    VMEM_BUDGET = 40 * 1024 * 1024
    x_bytes = jnp.dtype(x.dtype).itemsize
    while tile_n > 8 and _vmem_estimate(tile_n, in_ch, hid_pad, out_ch, x_bytes) > VMEM_BUDGET:
        tile_n = max(8, _round_up(tile_n // 2, 8))

    grid = (pl.cdiv(N, tile_n),)   # ragged last block handled by Pallas (OOB rows masked)
    full = lambda i: (0, 0)

    return pl.pallas_call(
        functools.partial(weakgnn_kernel, hidden=hidden),
        out_shape=jax.ShapeDtypeStruct((N, out_ch), jnp.float32),
        grid_spec=pltpu.PrefetchScalarGridSpec(
            num_scalar_prefetch=0,
            grid=grid,
            in_specs=[
                # Unpadded x: last block dim == full array dim (legal), no wrapper copy.
                pl.BlockSpec((tile_n, in_ch), lambda i: (i, 0)),
                pl.BlockSpec((in_ch, hid_pad), full),   # fused W (bf16)
                pl.BlockSpec((8, hid_pad), full),       # [b_fused; gamma; beta] slab (f32)
                pl.BlockSpec((hid_pad, out_ch), full),  # w_lin (bf16)
                pl.BlockSpec((1, out_ch), full),        # b_lin (f32)
            ],
            # Unpadded out_ch output (out_ch << 128 -> byte savings beat masked vst).
            out_specs=pl.BlockSpec((tile_n, out_ch), lambda i: (i, 0)),
        ),
        compiler_params=pltpu.CompilerParams(
            dimension_semantics=("parallel",),
            vmem_limit_bytes=48 * 1024 * 1024),
    )(x, prep["wf"], prep["slab"], prep["wl"], prep["bl"])


def init_params(key, in_ch, hidden, out_ch):
    """Deterministic synthetic parameters (shapes match the torch module)."""
    ks = jax.random.split(key, 6)
    scale = 0.1
    return {
        # weights stored [C_in, C_out]
        "w_node": scale * jax.random.normal(ks[0], (in_ch, hidden), jnp.float32),
        "b_node": scale * jax.random.normal(ks[1], (1, hidden), jnp.float32),
        "w_conv": scale * jax.random.normal(ks[2], (hidden, hidden), jnp.float32),
        "b_conv": scale * jax.random.normal(ks[3], (1, hidden), jnp.float32),
        "ln_gamma": jnp.ones((1, hidden), jnp.float32),
        "ln_beta": jnp.zeros((1, hidden), jnp.float32),
        "w_lin": scale * jax.random.normal(ks[4], (hidden, out_ch), jnp.float32),
        "b_lin": scale * jax.random.normal(ks[5], (1, out_ch), jnp.float32),
    }


def weakgnn_reference(x, params):
    """Pure-JAX f32 reference (un-fused, un-padded) for correctness check."""
    h = x @ params["w_node"] + params["b_node"]
    h = h @ params["w_conv"] + params["b_conv"]
    mean = jnp.mean(h, axis=-1, keepdims=True)
    var = jnp.mean((h - mean) ** 2, axis=-1, keepdims=True)
    h = (h - mean) / jnp.sqrt(var + 1e-5)
    h = h * params["ln_gamma"] + params["ln_beta"]
    h = jnp.maximum(h, 0.0)
    return h @ params["w_lin"] + params["b_lin"]


if __name__ == "__main__":
    key = jax.random.PRNGKey(0)
    k_x, k_p, k_e = jax.random.split(key, 3)

    N, in_ch, hidden, out_ch = 64, 16, 32, 8
    x = jax.random.normal(k_x, (N, in_ch), jnp.float32)
    # edge_index present for signature parity; unused by the MLP path.
    edge_index = jax.random.randint(k_e, (2, 128), 0, N, jnp.int32)

    params = init_params(k_p, in_ch, hidden, out_ch)
    prep = weakgnn_prepare(params)     # one-time parameter prep (fusion/pad/bf16)

    y = weakgnn_forward(x, edge_index, prep)
    y = jax.block_until_ready(y)

    y_ref = weakgnn_reference(x, params)
    assert y.shape == (N, out_ch)
    # Tolerance widened to cover bf16 matmul operands (accumulation is f32).
    assert jnp.allclose(y, y_ref, atol=5e-2, rtol=5e-2), \
        float(jnp.max(jnp.abs(y - y_ref)))

    print("KERNEL_OK")
</pallas_src>

<mosaic_0001>
module attributes {stable_mosaic.version = 11 : i64} {
  func.func @weakgnn_kernel(%arg0: i32, %arg1: memref<8x16xf32, #tpu.memory_space<vmem>>, %arg2: memref<16x128xbf16, #tpu.memory_space<vmem>>, %arg3: memref<8x128xf32, #tpu.memory_space<vmem>>, %arg4: memref<128x8xbf16, #tpu.memory_space<vmem>>, %arg5: memref<1x8xf32, #tpu.memory_space<vmem>>, %arg6: memref<8x8xf32, #tpu.memory_space<vmem>>) attributes {dimension_semantics = [#tpu.dimension_semantics<parallel>], iteration_bounds = array<i64: 8>, scalar_prefetch = 0 : i64, scratch_operands = 0 : i64, tpu.core_type = #tpu.core_type<tc>, window_params = [{transform_indices = @transform_0, window_bounds = array<i64: 8, 16>}, {pipeline_mode = #tpu.pipeline_mode<synchronous>, transform_indices = @transform_1, window_bounds = array<i64: 16, 128>}, {pipeline_mode = #tpu.pipeline_mode<synchronous>, transform_indices = @transform_2, window_bounds = array<i64: 8, 128>}, {pipeline_mode = #tpu.pipeline_mode<synchronous>, transform_indices = @transform_3, window_bounds = array<i64: 128, 8>}, {pipeline_mode = #tpu.pipeline_mode<synchronous>, transform_indices = @transform_4, window_bounds = array<i64: 1, 8>}, {transform_indices = @transform_5, window_bounds = array<i64: 8, 8>}]} {
    %c0 = arith.constant 0 : index
    %c0_0 = arith.constant 0 : index
    %0 = vector.load %arg1[%c0, %c0_0] : memref<8x16xf32, #tpu.memory_space<vmem>>, vector<8x16xf32>
    %1 = arith.truncf %0 : vector<8x16xf32> to vector<8x16xbf16>
    %c0_1 = arith.constant 0 : index
    %c0_2 = arith.constant 0 : index
    %2 = vector.load %arg2[%c0_1, %c0_2] : memref<16x128xbf16, #tpu.memory_space<vmem>>, vector<16x128xbf16>
    %cst = arith.constant dense<0.000000e+00> : vector<8x128xf32>
    %3 = tpu.matmul %1, %2, %cst {dimension_numbers = #tpu.dot_dimension_numbers<[1], [0], [0], [1], [0, 0, 1, 1], [], []>} : vector<8x16xbf16>, vector<16x128xbf16>, vector<8x128xf32> -> vector<8x128xf32>
    %c0_3 = arith.constant 0 : index
    %c0_4 = arith.constant 0 : index
    %4 = vector.load %arg3[%c0_3, %c0_4] : memref<8x128xf32, #tpu.memory_space<vmem>>, vector<8x128xf32>
    %5 = vector.extract_strided_slice %4 {offsets = [0, 0], sizes = [1, 128], strides = [1, 1]} : vector<8x128xf32> to vector<1x128xf32>
    %6 = vector.broadcast %5 : vector<1x128xf32> to vector<8x128xf32>
    %7 = arith.addf %3, %6 : vector<8x128xf32>
    %cst_5 = arith.constant dense<0.000000e+00> : vector<8xf32>
    %8 = vector.multi_reduction <add>, %7, %cst_5 [1] : vector<8x128xf32> to vector<8xf32>
    %9 = vector.shape_cast %8 : vector<8xf32> to vector<8x1xf32>
    %cst_6 = arith.constant 3.125000e-02 : f32
    %10 = vector.broadcast %cst_6 : f32 to vector<8x1xf32>
    %11 = arith.mulf %9, %10 : vector<8x1xf32>
    %12 = arith.mulf %7, %7 : vector<8x128xf32>
    %cst_7 = arith.constant dense<0.000000e+00> : vector<8xf32>
    %13 = vector.multi_reduction <add>, %12, %cst_7 [1] : vector<8x128xf32> to vector<8xf32>
    %14 = vector.shape_cast %13 : vector<8xf32> to vector<8x1xf32>
    %cst_8 = arith.constant 3.125000e-02 : f32
    %15 = vector.broadcast %cst_8 : f32 to vector<8x1xf32>
    %16 = arith.mulf %14, %15 : vector<8x1xf32>
    %17 = arith.mulf %11, %11 : vector<8x1xf32>
    %18 = arith.subf %16, %17 : vector<8x1xf32>
    %cst_9 = arith.constant 0.000000e+00 : f32
    %19 = vector.broadcast %cst_9 : f32 to vector<8x1xf32>
    %20 = arith.maximumf %18, %19 : vector<8x1xf32>
    %21 = vector.broadcast %11 : vector<8x1xf32> to vector<8x128xf32>
    %22 = arith.subf %7, %21 : vector<8x128xf32>
    %cst_10 = arith.constant 9.99999974E-6 : f32
    %23 = vector.broadcast %cst_10 : f32 to vector<8x1xf32>
    %24 = arith.addf %20, %23 : vector<8x1xf32>
    %25 = math.rsqrt %24 : vector<8x1xf32>
    %26 = vector.broadcast %25 : vector<8x1xf32> to vector<8x128xf32>
    %27 = arith.mulf %22, %26 : vector<8x128xf32>
    %28 = vector.extract_strided_slice %4 {offsets = [1, 0], sizes = [1, 128], strides = [1, 1]} : vector<8x128xf32> to vector<1x128xf32>
    %29 = vector.broadcast %28 : vector<1x128xf32> to vector<8x128xf32>
    %30 = arith.mulf %27, %29 : vector<8x128xf32>
    %31 = vector.extract_strided_slice %4 {offsets = [2, 0], sizes = [1, 128], strides = [1, 1]} : vector<8x128xf32> to vector<1x128xf32>
    %32 = vector.broadcast %31 : vector<1x128xf32> to vector<8x128xf32>
    %33 = arith.addf %30, %32 : vector<8x128xf32>
    %cst_11 = arith.constant 0.000000e+00 : f32
    %34 = vector.broadcast %cst_11 : f32 to vector<8x128xf32>
    %35 = arith.maximumf %33, %34 : vector<8x128xf32>
    %36 = arith.truncf %35 : vector<8x128xf32> to vector<8x128xbf16>
    %c0_12 = arith.constant 0 : index
    %c0_13 = arith.constant 0 : index
    %37 = vector.load %arg4[%c0_12, %c0_13] : memref<128x8xbf16, #tpu.memory_space<vmem>>, vector<128x8xbf16>
    %cst_14 = arith.constant dense<0.000000e+00> : vector<8x8xf32>
    %38 = tpu.matmul %36, %37, %cst_14 {dimension_numbers = #tpu.dot_dimension_numbers<[1], [0], [0], [1], [0, 0, 1, 1], [], []>} : vector<8x128xbf16>, vector<128x8xbf16>, vector<8x8xf32> -> vector<8x8xf32>
    %c0_15 = arith.constant 0 : index
    %c0_16 = arith.constant 0 : index
    %39 = vector.load %arg5[%c0_15, %c0_16] : memref<1x8xf32, #tpu.memory_space<vmem>>, vector<1x8xf32>
    %40 = vector.broadcast %39 : vector<1x8xf32> to vector<8x8xf32>
    %41 = arith.addf %38, %40 : vector<8x8xf32>
    %c0_17 = arith.constant 0 : index
    %c0_18 = arith.constant 0 : index
    %42 = vector.load %arg6[%c0_17, %c0_18] : memref<8x8xf32, #tpu.memory_space<vmem>>, vector<8x8xf32>
    tpu.vector_store %arg6[%c0_17, %c0_18], %41 {strides = array<i32>} : memref<8x8xf32, #tpu.memory_space<vmem>>, vector<8x8xf32>,
    return
  }
  func.func @transform_0(%arg0: i32) -> (i32, i32) {
    %c0_i32 = arith.constant 0 : i32
    %c0_i32_0 = arith.constant 0 : i32
    return %arg0, %c0_i32 : i32, i32
  }
  func.func @transform_1(%arg0: i32) -> (i32, i32) {
    %c0_i32 = arith.constant 0 : i32
    %c0_i32_0 = arith.constant 0 : i32
    %c0_i32_1 = arith.constant 0 : i32
    return %c0_i32, %c0_i32_0 : i32, i32
  }
  func.func @transform_2(%arg0: i32) -> (i32, i32) {
    %c0_i32 = arith.constant 0 : i32
    %c0_i32_0 = arith.constant 0 : i32
    %c0_i32_1 = arith.constant 0 : i32
    return %c0_i32, %c0_i32_0 : i32, i32
  }
  func.func @transform_3(%arg0: i32) -> (i32, i32) {
    %c0_i32 = arith.constant 0 : i32
    %c0_i32_0 = arith.constant 0 : i32
    %c0_i32_1 = arith.constant 0 : i32
    return %c0_i32, %c0_i32_0 : i32, i32
  }
  func.func @transform_4(%arg0: i32) -> (i32, i32) {
    %c0_i32 = arith.constant 0 : i32
    %c0_i32_0 = arith.constant 0 : i32
    %c0_i32_1 = arith.constant 0 : i32
    return %c0_i32, %c0_i32_0 : i32, i32
  }
  func.func @transform_5(%arg0: i32) -> (i32, i32) {
    %c0_i32 = arith.constant 0 : i32
    %c0_i32_0 = arith.constant 0 : i32
    return %arg0, %c0_i32 : i32, i32
  }
}

</mosaic_0001>

<bundles_post_ra>
// kernel: tpu_custom_call.1
= control target key start
LH: loop header
LB: loop body
LE: loop exit
PB: predicated region body
PF: predicated region fallthrough
CT: control target
= control target key end

     0   :  { %s519_s18 = smov 0   ;;  %s576_s0 = inlined_call_operand.vmem [shape: f32[64,16], index: 0, kind: input, shape index: {}]   ;;  %s577_s1 = inlined_call_operand.vmem [shape: bf16[16,128], index: 1, kind: input, shape index: {}]   ;;  %s578_s2 = inlined_call_operand.vmem [shape: f32[8,128], index: 2, kind: input, shape index: {}]   ;;  %s579_s3 = inlined_call_operand.vmem [shape: bf16[128,8], index: 3, kind: input, shape index: {}]   ;;  %s580_s4 = inlined_call_operand.vmem [shape: f32[1,8], index: 4, kind: input, shape index: {}]   ;;  %s581_s5 = inlined_call_operand.vmem [shape: f32[64,8], index: 5, kind: output, shape index: {}]  }
   0x1 LB: > { %s415_s19 = sadd.s32 4294967295, %s487_s18   ;;  %p419_p0 = scmp.ge.s32.totalorder %s487_s18, 1  ;;  %s487_s18 = sphi %s519_s18, %s15_s18  }
   0x2   : > { %p186_p1 = scmp.lt.s32.totalorder %s487_s18, 9 }
   0x4   : > { %p187_p2 = pnand %p419_p0, %p186_p1 }
   0x5   : > { %p212_p3 = scmp.lt.s32.totalorder (!%p187_p2), %s415_s19, 7 }
   0x6   : > { %190 = sbr.rel (%p187_p2) target bundleno = 439 (0x1b7), region = 40 }
   0xb   : > { %v461_v0 = vld [vmem:[%s577_s1] sm:$0xff]  ;;  %s583_s19 = smov (!%p212_p3, %s415_s19), 7  ;;  %vm233_vm0 = vcmask 130048   ;;  %v469_v9 = vld [vmem:[%s579_s3 + $0x38] sm:$0xff]  ;;  %v468_v10 = vld [vmem:[%s579_s3 + $0x30] sm:$0xff]  ;;  %vm360_vm4 = vcmask 64512  }
   0xc   : > { %244 = vmatpush.bf16.msra.mxu0 %v461_v0  ;;  %s420_s22 = sshll.u32 %s583_s19, 3  ;;  %v225_v3 = vld [vmem:[%s578_s2] sm:$0xff]  ;;  %347 = vmatpush.bf16.msra.mxu1 %v469_v9  ;;  %v467_v11 = vld [vmem:[%s579_s3 + $0x28] sm:$0xff]  ;;  %v465_v13 = vld [vmem:[%s579_s3 + $0x18] sm:$0xff] }
   0xd   : > { %s215_s25 = scalar_lea.vmem %s576_s0, %s420_s22  ;;  %v226_v4 = vperm.slane %v225_v3, 0  ;;  %v466_v12 = vld [vmem:[%s579_s3 + $0x20] sm:$0xff]  ;;  %v464_v14 = vld [vmem:[%s579_s3 + $0x10] sm:$0xff]  ;;  %v463_v16 = vld [vmem:[%s579_s3 + $0x8] sm:$0xff]  ;;  %v273_v32 = vperm.slane %v225_v3, 1  ;;  %v275_v35 = vperm.slane %v225_v3, 2  ;;  %s219_s26 = scalar_lea.vmem %s581_s5, %s420_s22 }
   0xe   : > { %v221_v1 = vld [vmem:[%s215_s25] sm:$0xff] }
   0xf   : > { %v222_v2 = vpack.c.bf16 %v221_v1, %v221_v1  ;;  %v462_v18 = vld [vmem:[%s579_s3] sm:$0xff] }
  0x10   : > { %348 = vmatpush.bf16.msra.mxu1 %v468_v10  ;;  %v478_v40 = vld [vmem:[%s580_s4] ss:$0 sm:$0xff] }
  0x11   : > { %426 = vmatmul.msk.bf16.vlgmr.msra.gmra.mxu0 %vm233_vm0, %v222_v2 }
  0x14   : > { %349 = vmatpush.bf16.msra.mxu1 %v467_v11 }
  0x18   : > { %350 = vmatpush.bf16.msra.mxu1 %v466_v12 }
  0x1c   : > { %351 = vmatpush.bf16.msra.mxu1 %v465_v13 }
  0x20   : > { %352 = vmatpush.bf16.msra.mxu1 %v464_v14 }
  0x24   : > { %353 = vmatpush.bf16.msra.mxu1 %v463_v16 }
  0x28   : > { %354 = vmatpush.bf16.msra.mxu1 %v462_v18 }
  0x8e   : > { %v246_v5 = vpop.f32.mrf.mxu0 }
  0x8f   : > { %v247_v6 = vadd.f32 %v246_v5, %v226_v4 }
  0x91   : > { %250 = vadd.xlane.f32.xlu0 %v247_v6  ;;  %v253_v8 = vmul.f32 %v247_v6, %v247_v6 }
  0x96   : > { %v248_v7 = vpop.f32.mrf.mxu0 }
  0x99   : > { %254 = vadd.xlane.f32.xlu0 %v253_v8 }
 0x104   : > { %v251_v15 = vpop.xlane.xlu0 %250 }
 0x105   : > { %v252_v17 = vmul.f32 0.03125, %v251_v15 }
 0x107   : > { %v257_v20 = vmul.f32 %v252_v17, %v252_v17  ;;  %v260_v31 = vsub.f32 %v247_v6, %v252_v17 }
 0x10c   : > { %v255_v19 = vpop.xlane.xlu0 %254 }
 0x10d   : > { %v256_v21 = vmul.f32 0.03125, %v255_v19 }
 0x10f   : > { %v258_v22 = vsub.f32 %v256_v21, %v257_v20 }
 0x111   : > { %v259_v23 = vmax.f32 %v258_v22, 0.0 }
 0x113   : > { %v261_v24 = vadd.f32 1e-05, %v259_v23 }
 0x115   : > { %479 = vrsqrt.f32 %v261_v24  ;;  %vm268_vm2 = vweird.f32 %v261_v24 }
 0x11b   : > { %v480_v25 = vpop.eup %479 }
 0x11c   : > { %v263_v26 = vmul.f32 %v480_v25, %v261_v24  ;;  %vm269_vm1 = vweird.f32 %v480_v25 }
 0x11d   : > { %vm270_vm3 = vmor %vm268_vm2, %vm269_vm1 }
 0x11e   : > { %v264_v27 = vmul.f32 %v480_v25, %v263_v26 }
 0x120   : > { %v265_v28 = vmul.f32 0.5, %v264_v27 }
 0x122   : > { %v266_v29 = vsub.f32 1.5, %v265_v28 }
 0x124   : > { %v267_v30 = vmul.f32 %v480_v25, %v266_v29 }
 0x126   : > { %v271_v33 = vsel %vm270_vm3, %v480_v25, %v267_v30 }
 0x127   : > { %v272_v34 = vmul.f32 %v271_v33, %v260_v31 }
 0x129   : > { %v274_v36 = vmul.f32 %v273_v32, %v272_v34 }
 0x12b   : > { %v276_v37 = vadd.f32 %v275_v35, %v274_v36 }
 0x12d   : > { %v277_v38 = vmax.f32 %v276_v37, 0.0 }
 0x12f   : > { %v278_v39 = vpack.c.bf16 %v277_v38, %v277_v38 }
 0x131   : > { %355 = vmatmul.bf16.vlgmr.msra.gmra.mxu1 %v278_v39 }
 0x1ae   : > { %v356_v41 = vpop.f32.mrf.mxu1 }
 0x1af   : > { %v357_v42 = vadd.f32 %v478_v40, %v356_v41 }
 0x1b1   : > { %361 = vst.msk [vmem:[%s219_s26] sm:$0xff] %vm360_vm4, %v357_v42 }
 0x1b6   : > { %v358_v43 = vpop.f32.mrf.mxu1 }
 0x1b7 PF: > { %s15_s18 = sadd.s32 1, %s487_s18  }
 0x1b8   : > { %p12_p4 = scmp.ge.s32.totalorder %s15_s18, 10  }
 0x1ba   :  { %14 = sbr.rel (!%p12_p4) target bundleno = 1 (0x1), region = 70 }

</bundles_post_ra>
